<compile_context>
chip_gen: v7x
topology: tpu7x:2x2x1
jax: 0.10.0
libtpu: 0.0.40
codegen_flags: <defaults>
</compile_context>

<pallas_src>
import functools
import math

import jax
import jax.numpy as jnp
from jax.experimental import pallas as pl
from jax.experimental.pallas import tpu as pltpu

_LANE = 128


def _sublane_multiple(dtype) -> int:
    """Sublane packing multiple for a dtype (f32: 8, bf16: 16, int8/fp8: 32)."""
    return max(8, 32 // jnp.dtype(dtype).itemsize)


def _round_up(x: int, m: int) -> int:
    return (x + m - 1) // m * m


def make_positional_encoding_table(max_len: int, d_model: int,
                                   dtype=jnp.float32) -> jnp.ndarray:
    """Deterministic sin/cos table, same math as the PyTorch __init__."""
    position = jnp.arange(max_len, dtype=jnp.float32)[:, None]            # [L, 1]
    div_term = jnp.exp(
        jnp.arange(0, d_model, 2, dtype=jnp.float32)
        * (-math.log(10000.0) / d_model)
    )                                                                     # [D/2]
    angles = position * div_term                                          # [L, D/2]
    pe = jnp.zeros((max_len, d_model), dtype=jnp.float32)
    pe = pe.at[:, 0::2].set(jnp.sin(angles))
    pe = pe.at[:, 1::2].set(jnp.cos(angles))
    return pe.astype(dtype)


def _vmem_budget():
    """Generation-aware (vmem_limit_bytes, target_tile_bytes)."""
    cap = 64 << 20  # conservative fallback = v7x-sized VMEM
    try:
        cap = int(pltpu.get_tpu_info().vmem_capacity_bytes)
    except Exception:
        pass
    vmem_limit = max(16 << 20, min(cap // 2, 64 << 20))   # 32 MiB v7x, 64 MiB v5e/v6e
    target_tile = (8 << 20) if cap >= (128 << 20) else (4 << 20)
    return vmem_limit, target_tile


def _pick_seq_tile(S: int, B: int, D: int, dtype, *, flat: bool,
                   target_tile_bytes: int, vmem_limit_bytes: int) -> int:
    """Sequence-tile size (positions per grid step), (8,128)/dtype-padding aware."""
    item = jnp.dtype(dtype).itemsize
    sub = _sublane_multiple(dtype)
    d_pad = _round_up(D, _LANE)
    if flat:
        # x/out blocks are (ts*B, D); ts is a multiple of `sub`, so the sublane
        # dim ts*B is dense.  pe block is (ts, D).
        x_row = B * d_pad * item
        pe_row = d_pad * item
    else:
        # x/out blocks are (ts, B, D): the (B, D) plane is (sublane, lane)
        # tiled.  pe block is (ts, 1, D): middle dim pads up to `sub` sublanes.
        x_row = _round_up(B, sub) * d_pad * item
        pe_row = sub * d_pad * item

    # ~target-sized x tile ...
    ts = max(sub, (target_tile_bytes // x_row) // sub * sub)
    # ... but keep the real double-buffered footprint (x + out + pe, padded)
    # comfortably below the VMEM limit (75% headroom for compiler scratch).
    per_pos = 2 * (2 * x_row + pe_row)
    ts_vmem = max(sub, ((vmem_limit_bytes * 3 // 4) // per_pos) // sub * sub)
    ts = min(ts, ts_vmem)
    # Guarantee >= 2 grid steps when there is enough work: lets the "parallel"
    # grid axis shard across v7x's two TensorCores.
    if S * x_row > 2 * target_tile_bytes:
        ts = min(ts, max(sub, _round_up((S + 1) // 2, sub)))
    return min(ts, S)


def _pos_enc_kernel_3d(x_ref, pe_ref, o_ref):
    # x/o: (ts, B, D); pe: (ts, 1, D) — plain per-plane sublane broadcast (VPU).
    o_ref[...] = x_ref[...] + pe_ref[...]


def _pos_enc_kernel_flat(x_ref, pe_ref, o_ref, *, batch):
    # x/o: (ts*B, D) lane/sublane-dense; pe: (ts, D).
    pe = pe_ref[...]
    if batch == 1:
        pe_rep = pe
    else:
        ts, d = pe.shape
        # Broadcast each position's row `batch` times along sublanes; the
        # dim-merge keeps the minor (lane) dim untouched.
        pe_rep = jnp.broadcast_to(pe[:, None, :], (ts, batch, d)).reshape(ts * batch, d)
    o_ref[...] = x_ref[...] + pe_rep


def positional_encoding(x: jnp.ndarray, pe_table: jnp.ndarray, *,
                        in_place: bool = False) -> jnp.ndarray:
    """x: [S, B, D]; pe_table: [max_len, D]; returns [S, B, D].

    Set in_place=True only when the caller donates x (otherwise XLA inserts a
    defensive copy that adds HBM traffic).
    """
    S, B, D = x.shape
    dtype = x.dtype
    sub = _sublane_multiple(dtype)
    vmem_limit, target_tile = _vmem_budget()

    pe = pe_table[:S].astype(dtype)                                       # [S, D]
    flat = (B % sub != 0) or (D % _LANE != 0)
    ts = _pick_seq_tile(S, B, D, dtype, flat=flat,
                        target_tile_bytes=target_tile,
                        vmem_limit_bytes=vmem_limit)
    grid = (pl.cdiv(S, ts),)
    cparams = pltpu.CompilerParams(
        dimension_semantics=("parallel",),
        vmem_limit_bytes=vmem_limit,
    )
    aliases = {0: 0} if in_place else {}

    if flat:
        # Lane/sublane-dense 2-D view: [S*B, D] (same HBM bytes, row-major).
        x2 = x.reshape(S * B, D)
        out2 = pl.pallas_call(
            functools.partial(_pos_enc_kernel_flat, batch=B),
            out_shape=jax.ShapeDtypeStruct((S * B, D), dtype),
            grid=grid,
            in_specs=[
                pl.BlockSpec((ts * B, D), lambda i: (i, 0)),
                pl.BlockSpec((ts, D), lambda i: (i, 0)),
            ],
            out_specs=pl.BlockSpec((ts * B, D), lambda i: (i, 0)),
            input_output_aliases=aliases,
            compiler_params=cparams,
        )(x2, pe)
        return out2.reshape(S, B, D)

    # Aligned path: (B, D) plane is already (sublane, lane)-dense.
    pe3 = pe[:, None, :]                                                  # [S, 1, D]
    return pl.pallas_call(
        _pos_enc_kernel_3d,
        out_shape=jax.ShapeDtypeStruct((S, B, D), dtype),
        grid=grid,
        in_specs=[
            pl.BlockSpec((ts, B, D), lambda i: (i, 0, 0)),
            pl.BlockSpec((ts, 1, D), lambda i: (i, 0, 0)),
        ],
        out_specs=pl.BlockSpec((ts, B, D), lambda i: (i, 0, 0)),
        input_output_aliases=aliases,
        compiler_params=cparams,
    )(x, pe3)


if __name__ == "__main__":
    key = jax.random.PRNGKey(0)

    # Case 1: module-like small shape (seq=8, batch=2, d_model=32).
    # Exercises the flattened lane-dense path (B < 8, D % 128 != 0).
    S, B, D = 8, 2, 32
    MAX_LEN = 64  # synthetic small max_len (module default is 5000)
    x = jax.random.normal(key, (S, B, D), dtype=jnp.float32)
    pe_table = make_positional_encoding_table(MAX_LEN, D)
    ref = x + pe_table[:S][:, None, :]
    out = jax.block_until_ready(positional_encoding(x, pe_table))
    assert out.shape == (S, B, D)
    assert jnp.allclose(out, ref, atol=1e-6, rtol=1e-6)

    # Case 2: aligned shape (B multiple of 8, D multiple of 128).
    # Exercises the dense 3-D path with the (ts, 1, D) pe plane broadcast.
    S2, B2, D2 = 16, 8, 128
    x2 = jax.random.normal(jax.random.PRNGKey(1), (S2, B2, D2), dtype=jnp.float32)
    pe_table2 = make_positional_encoding_table(32, D2)
    ref2 = x2 + pe_table2[:S2][:, None, :]
    out2 = jax.block_until_ready(positional_encoding(x2, pe_table2))
    assert out2.shape == (S2, B2, D2)
    assert jnp.allclose(out2, ref2, atol=1e-6, rtol=1e-6)

    print("KERNEL_OK")
</pallas_src>

<mosaic_0001>
module attributes {stable_mosaic.version = 11 : i64} {
  func.func @_pos_enc_kernel_flat(%arg0: i32, %arg1: memref<16x32xf32, #tpu.memory_space<vmem>>, %arg2: memref<8x32xf32, #tpu.memory_space<vmem>>, %arg3: memref<16x32xf32, #tpu.memory_space<vmem>>) attributes {dimension_semantics = [#tpu.dimension_semantics<parallel>], iteration_bounds = array<i64: 1>, scalar_prefetch = 0 : i64, scratch_operands = 0 : i64, tpu.core_type = #tpu.core_type<tc>, window_params = [{transform_indices = @transform_0, window_bounds = array<i64: 16, 32>}, {transform_indices = @transform_1, window_bounds = array<i64: 8, 32>}, {transform_indices = @transform_2, window_bounds = array<i64: 16, 32>}]} {
    %c0 = arith.constant 0 : index
    %c0_0 = arith.constant 0 : index
    %0 = vector.load %arg2[%c0, %c0_0] : memref<8x32xf32, #tpu.memory_space<vmem>>, vector<8x32xf32>
    %1 = vector.shape_cast %0 : vector<8x32xf32> to vector<8x1x32xf32>
    %2 = vector.shape_cast %1 : vector<8x1x32xf32> to vector<8x1x32xf32>
    %3 = vector.broadcast %2 : vector<8x1x32xf32> to vector<8x2x32xf32>
    %4 = vector.shape_cast %3 : vector<8x2x32xf32> to vector<16x32xf32>
    %c0_1 = arith.constant 0 : index
    %c0_2 = arith.constant 0 : index
    %5 = vector.load %arg1[%c0_1, %c0_2] : memref<16x32xf32, #tpu.memory_space<vmem>>, vector<16x32xf32>
    %6 = arith.addf %5, %4 : vector<16x32xf32>
    %c0_3 = arith.constant 0 : index
    %c0_4 = arith.constant 0 : index
    %7 = vector.load %arg3[%c0_3, %c0_4] : memref<16x32xf32, #tpu.memory_space<vmem>>, vector<16x32xf32>
    tpu.vector_store %arg3[%c0_3, %c0_4], %6 {strides = array<i32>} : memref<16x32xf32, #tpu.memory_space<vmem>>, vector<16x32xf32>,
    return
  }
  func.func @transform_0(%arg0: i32) -> (i32, i32) {
    %c0_i32 = arith.constant 0 : i32
    %c0_i32_0 = arith.constant 0 : i32
    return %arg0, %c0_i32 : i32, i32
  }
  func.func @transform_1(%arg0: i32) -> (i32, i32) {
    %c0_i32 = arith.constant 0 : i32
    %c0_i32_0 = arith.constant 0 : i32
    return %arg0, %c0_i32 : i32, i32
  }
  func.func @transform_2(%arg0: i32) -> (i32, i32) {
    %c0_i32 = arith.constant 0 : i32
    %c0_i32_0 = arith.constant 0 : i32
    return %arg0, %c0_i32 : i32, i32
  }
}

</mosaic_0001>

<bundles_post_ra>
// kernel: tpu_custom_call.1
= control target key start
LH: loop header
LB: loop body
LE: loop exit
PB: predicated region body
PF: predicated region fallthrough
CT: control target
= control target key end

     0   :  { %7 = vsyncpa [#allocation3], 0  ;;  %s325_s0 = inlined_call_operand.hbm [shape: f32[16,32], index: 0, kind: input, shape index: {}]   ;;  %s326_s1 = inlined_call_operand.hbm [shape: f32[8,32], index: 1, kind: input, shape index: {}]   ;;  %s327_s2 = inlined_call_operand.hbm [shape: f32[16,32], index: 2, kind: output, shape index: {}]  }
   0x1   :  { %8 = vsyncpa [#allocation6], 0 }
   0x2   :  { %9 = vsyncpa [#allocation4], 0  ;;  %s261_s9 = smov [#allocation2]   ;;  %s189_s13 = scalar_lea.hbm %s325_s0, 256 }
   0x3   :  { %s15_s10 = sshll.u32 %s261_s9, 4  ;;  %p190_p0 = scmp.ne.s32.totalorder %s325_s0, %s189_s13  ;;  %s16_s10 = int_to_ptr.vmem [resolvable:$true] %s15_s10 }
   0x4   :  { %p193_p1 = scmp.lt.u32.totalorder %s189_s13, %s325_s0 }
   0x6   :  { %p195_p2 = pnand %p193_p1, %p190_p0 }
   0x8   :  { %198 = shalt.err (!%p195_p2)
}
   0x9   :  { %s199_s18 = scalar_lea.vmem %s16_s10, 256  ;;  %p204_p4 = scmp.lt.s32.totalorder %s16_s10, %s16_s10 }
   0xa   :  { %p200_p3 = scmp.ne.s32.totalorder %s16_s10, %s199_s18  ;;  %p205_p5 = scmp.lt.s32.totalorder %s199_s18, %s199_s18 }
   0xc   :  { %p206_p6 = por %p205_p5, %p204_p4 }
   0xe   :  { %p207_p7 = pnand %p206_p6, %p200_p3 }
  0x10   :  { %210 = shalt.err (!%p207_p7)
}
  0x11   :  { %s262_s19 = smov 128   ;;  %s263_s20 = smov 8  }
  0x12   :  { %21 = dma.hbm_to_vmem [thread:$0]  %s325_s0, 256, %s16_s10, [#allocation3], %s262_s19, %s262_s19, %s263_s20  }
  0x13   :  { %s264_s23 = smov [#allocation5]   ;;  %s211_s27 = scalar_lea.hbm %s326_s1, 128 }
  0x14   :  { %s28_s24 = sshll.u32 %s264_s23, 4  ;;  %p212_p8 = scmp.ne.s32.totalorder %s326_s1, %s211_s27  ;;  %s29_s24 = int_to_ptr.vmem [resolvable:$true] %s28_s24 }
  0x15   :  { %p215_p9 = scmp.lt.u32.totalorder %s211_s27, %s326_s1 }
  0x17   :  { %p217_p10 = pnand %p215_p9, %p212_p8 }
  0x19   :  { %220 = shalt.err (!%p217_p10)
}
  0x1a   :  { %s221_s4 = scalar_lea.vmem %s29_s24, 128  ;;  %p226_p12 = scmp.lt.s32.totalorder %s29_s24, %s29_s24 }
  0x1b   :  { %p222_p11 = scmp.ne.s32.totalorder %s29_s24, %s221_s4  ;;  %p227_p13 = scmp.lt.s32.totalorder %s221_s4, %s221_s4 }
  0x1d   :  { %p228_p0 = por %p227_p13, %p226_p12 }
  0x1f   :  { %p229_p1 = pnand %p228_p0, %p222_p11 }
  0x21   :  { %232 = shalt.err (!%p229_p1)
}
  0x22   :  { %31 = dma.hbm_to_vmem [thread:$0]  %s326_s1, 128, %s29_s24, [#allocation6]  }
  0x23   :  { %255 = dma.done.wait [#allocation3], 256  }
  0x24   :  { %256 = vsyncadd [#allocation3], 4294967040 }
  0x25   :  { %257 = dma.done.wait [#allocation6], 128  }
  0x26   :  { %258 = vsyncadd [#allocation6], 4294967168  ;;  %v44_v0 = vlaneseq  ;;  %v265_v1 = vmov 1966171168   ;;  %v266_v6 = vmov 1983009808  }
  0x27   :  { %v42_v2 = vunpack.c.l.s4 %v265_v1  ;;  %v126_v7 = vunpack.c.l.s4 %v266_v6  ;;  %v38_v8 = vld [vmem:[#allocation5] sm:$0xff]  ;;  %v121_v40 = vld [vmem:[#allocation2] sm:$0xff]  ;;  %vm161_vm0 = vcmask 261120   ;;  %v122_v43 = vld [vmem:[#allocation2 + $0x8] sm:$0xff]  ;;  %s267_s1 = smov [#allocation7]  }
  0x28   :  { %v45_v3 = vshrl.u32 %v44_v0, 7  ;;  %v40_v11 = vcombine.high %v38_v8, %v38_v8  ;;  %s169_s6 = sshll.u32 %s267_s1, 4  ;;  %s170_s6 = int_to_ptr.vmem [resolvable:$true] %s169_s6 }
  0x29   :  { %v43_v4 = vunpack.c.0.s8 %v42_v2  ;;  %v127_v12 = vunpack.c.0.s8 %v126_v7  ;;  %s233_s7 = scalar_lea.vmem %s170_s6, 256  ;;  %p238_p3 = scmp.lt.s32.totalorder %s170_s6, %s170_s6 }
  0x2a   :  { %v91_v10 = vsub.s32 0, %v45_v3  ;;  %p234_p2 = scmp.ne.s32.totalorder %s170_s6, %s233_s7  ;;  %p239_p4 = scmp.lt.s32.totalorder %s233_s7, %s233_s7 }
  0x2b   :  { %v46_v5 = vsub.s32 %v43_v4, %v45_v3  ;;  %v130_v20 = vsub.s32 %v127_v12, %v45_v3 }
  0x2c   :  { %p240_p5 = por %p239_p4, %p238_p3 }
  0x2d   :  { %v47_v9 = vrot.slane %v38_v8, %v46_v5  ;;  %v54_v15 = vrot.slane %v40_v11, %v46_v5 }
  0x2e   :  { %p241_p6 = pnand %p240_p5, %p234_p2 }
  0x2f   :  { %v55_v13 = vcombine.high %v47_v9, %v47_v9  ;;  %v63_v14 = vrot.slane %v47_v9, %v46_v5  ;;  %v56_v19 = vcombine.high %v54_v15, %v54_v15  ;;  %v70_v21 = vrot.slane %v54_v15, %v46_v5 }
  0x31   :  { %v77_v16 = vrot.slane %v55_v13, %v46_v5  ;;  %v85_v17 = vcombine.high %v63_v14, %v63_v14  ;;  %v92_v18 = vrot.slane %v63_v14, %v91_v10  ;;  %v84_v25 = vrot.slane %v56_v19, %v46_v5 }
  0x32   :  { %v86_v26 = vcombine.high %v70_v21, %v70_v21  ;;  %v108_v27 = vrot.slane %v70_v21, %v91_v10 }
  0x33   :  { %v87_v22 = vcombine.high %v77_v16, %v77_v16  ;;  %v96_v23 = vrot.slane %v77_v16, %v91_v10  ;;  %v100_v24 = vrot.slane %v85_v17, %v91_v10  ;;  %v88_v30 = vcombine.high %v84_v25, %v84_v25 }
  0x34   :  { %v112_v31 = vrot.slane %v84_v25, %v91_v10  ;;  %v116_v32 = vrot.slane %v86_v26, %v91_v10 }
  0x35   :  { %v104_v28 = vrot.slane %v87_v22, %v91_v10  ;;  %v123_v29 = vcombine.low %v92_v18, %v96_v23  ;;  %v120_v35 = vrot.slane %v88_v30, %v91_v10 }
  0x36   :  { %v140_v36 = vcombine.low %v108_v27, %v112_v31 }
  0x37   :  { %v124_v33 = vcombine.low %v100_v24, %v104_v28  ;;  %v131_v34 = vrot.slane %v123_v29, %v130_v20  ;;  %v141_v38 = vcombine.low %v116_v32, %v120_v35 }
  0x38   :  { %v148_v39 = vrot.slane %v140_v36, %v130_v20 }
  0x39   :  { %v138_v37 = vrot.slane %v124_v33, %v130_v20  ;;  %v155_v42 = vrot.slane %v141_v38, %v130_v20 }
  0x3b   :  { %v139_v41 = vcombine.low %v131_v34, %v138_v37  ;;  %v156_v45 = vcombine.low %v148_v39, %v155_v42 }
  0x3d   :  { %v159_v44 = vadd.f32 %v139_v41, %v121_v40  ;;  %v160_v46 = vadd.f32 %v156_v45, %v122_v43 }
  0x3f   :  { %162 = vst.msk [vmem:[#allocation7] sm:$0xff] %vm161_vm0, %v159_v44  ;;  %163 = vst.msk [vmem:[#allocation7 + $0x8] sm:$0xff] %vm161_vm0, %v160_v46 }
  0x40   :  { %244 = shalt.err (!%p241_p6)
}
  0x41   :  { %s245_s10 = scalar_lea.hbm %s327_s2, 256 }
  0x42   :  { %p246_p7 = scmp.ne.s32.totalorder %s327_s2, %s245_s10  ;;  %p249_p8 = scmp.lt.u32.totalorder %s245_s10, %s327_s2 }
  0x44   :  { %p251_p9 = pnand %p249_p8, %p246_p7 }
  0x46   :  { %254 = shalt.err (!%p251_p9)
}
  0x47   :  { %175 = dma.vmem_to_hbm [thread:$0]  %s170_s6, 256, %s327_s2, [#allocation4], %s262_s19, %s262_s19, %s263_s20  }
  0x48   :  { %259 = dma.done.wait [#allocation4], 256  }
  0x49   :  { %260 = vsyncadd [#allocation4], 4294967040 }
  0x4a   :  { %179 = vsyncpa [#allocation3], 1 }
  0x4b   :  { %180 = vsyncpa [#allocation6], 1 }
  0x4c   :  { %181 = vsyncpa [#allocation4], 1 }

</bundles_post_ra>
